<compile_context>
chip_gen: v6e
topology: v6e:2x2x1
jax: 0.10.0
libtpu: 0.0.40
codegen_flags: <defaults>
</compile_context>

<pallas_src>
import functools

import jax
import jax.numpy as jnp
from jax import lax
from jax.experimental import pallas as pl
from jax.experimental.pallas import tpu as pltpu

EPS = 1e-5  # nn.InstanceNorm1d default eps


# --------------------------------------------------------------------------- helpers
def _largest_divisor_at_most(n, cap):
    cap = max(1, min(n, cap))
    for d in range(cap, 0, -1):
        if n % d == 0:
            return d
    return 1


def _device_info():
    """Returns (per-step tile budget in input-dtype bytes, VMEM capacity bytes)."""
    kind = ""
    try:
        kind = jax.devices()[0].device_kind.lower()
    except Exception:
        pass
    vmem_cap = 64 << 20  # conservative default (v7x per-TensorCore VMEM)
    try:
        info = pltpu.get_tpu_info()
        cap = int(getattr(info, "vmem_capacity_bytes", 0) or 0)
        if cap > 0:
            vmem_cap = cap
    except Exception:
        pass
    vmem_cap = max(32 << 20, min(vmem_cap, 128 << 20))
    if "v7" in kind:
        vmem_cap = min(vmem_cap, 64 << 20)  # 64 MiB per TensorCore on v7x
    if "v5" in kind:
        budget = 2 << 20   # v5e: 16 MiB scoped-VMEM default, lowest HBM BW
    else:
        budget = 4 << 20   # v6e / v7x / unknown: larger tiles amortize per-step overhead
    return budget, vmem_cap


def _maybe_vmem_limit(need_bytes, vmem_cap):
    if need_bytes <= (12 << 20):
        return None  # comfortably under every generation's scoped default
    return int(min(need_bytes + (4 << 20), (vmem_cap * 9) // 10))


def _pick_tiles(B, L, D, itemsize, budget):
    """Pick (TB, TD) so each (TB, L, TD) tile is ~budget bytes of the input dtype."""
    if D % 128 == 0:
        td = 128
        cand = 256
        while cand <= D:  # longer contiguous HBM bursts when the budget allows
            if D % cand == 0 and cand * L * itemsize <= budget:
                td = cand
            cand += 128
    else:
        td = D  # small / unaligned feature axis: keep full extent
    per_batch = L * td * itemsize
    tb = _largest_divisor_at_most(B, max(1, budget // per_batch))
    return tb, td


# ---------------------------------------------------------------- single-pass kernel
def _mynorm1d_kernel(x_ref, o_ref, *, inv_n, groups, group_stride):
    """Block (TB, Lr, TD). Normalize over Lr (sublane axis) and, when groups > 1,
    also over the `groups` lane-packed chunks of `group_stride` original features."""
    x = x_ref[...].astype(jnp.float32)                     # stats in f32
    s = jnp.sum(x, axis=1, keepdims=True)                  # (TB, 1, TD)
    span = groups * group_stride
    shift = group_stride
    while shift < span:                                    # XLU roll-tree over packed groups
        s = s + pltpu.roll(s, shift=shift, axis=2)
        shift *= 2
    mean = s * inv_n
    xc = x - mean                                          # x dead after this; xc reused
    ss = jnp.sum(xc * xc, axis=1, keepdims=True)           # biased variance numerator
    shift = group_stride
    while shift < span:
        ss = ss + pltpu.roll(ss, shift=shift, axis=2)
        shift *= 2
    o_ref[...] = (xc * lax.rsqrt(ss * inv_n + EPS)).astype(o_ref.dtype)


# ----------------------------------------------------- two-pass kernels (large L path)
def _stats_kernel(x_ref, s_ref, ss_ref, *, seq_len, tile_l):
    li = pl.program_id(2)

    @pl.when(li == 0)
    def _():
        s_ref[...] = jnp.zeros_like(s_ref)
        ss_ref[...] = jnp.zeros_like(ss_ref)

    x = x_ref[...].astype(jnp.float32)                     # (1, TL, TD)
    row = li * tile_l + lax.broadcasted_iota(jnp.int32, x.shape, 1)
    x = jnp.where(row < seq_len, x, 0.0)                   # mask ragged last L tile
    s_ref[...] += jnp.sum(x, axis=1, keepdims=True)
    ss_ref[...] += jnp.sum(x * x, axis=1, keepdims=True)


def _apply_kernel(x_ref, mean_ref, rstd_ref, o_ref):
    o_ref[...] = ((x_ref[...].astype(jnp.float32) - mean_ref[...])
                  * rstd_ref[...]).astype(o_ref.dtype)


def _mynorm1d_two_pass(xb, n_total, groups, group_stride, itemsize, budget, vmem_cap):
    """xb: (B, Lb, Db) (possibly lane-packed); normalization count is n_total."""
    B, Lb, Db = xb.shape
    if Db % 128 == 0:
        td = 128
        for cand in (1024, 512, 384, 256):
            if Db % cand == 0:
                td = cand
                break
    else:
        td = Db
    tl = max(8, (budget // max(1, td * itemsize)) // 8 * 8)
    if tl >= Lb:
        tl = Lb
    n_l = pl.cdiv(Lb, tl)
    n_d = Db // td
    tile_elems = tl * td

    need = 2 * tile_elems * itemsize + 2 * tile_elems * 4 + (2 << 20)
    s, ss = pl.pallas_call(
        functools.partial(_stats_kernel, seq_len=Lb, tile_l=tl),
        out_shape=(jax.ShapeDtypeStruct((B, 1, Db), jnp.float32),
                   jax.ShapeDtypeStruct((B, 1, Db), jnp.float32)),
        grid=(B, n_d, n_l),
        in_specs=[pl.BlockSpec((1, tl, td), lambda b, d, l: (b, l, d))],
        out_specs=(pl.BlockSpec((1, 1, td), lambda b, d, l: (b, 0, d)),
                   pl.BlockSpec((1, 1, td), lambda b, d, l: (b, 0, d))),
        compiler_params=pltpu.CompilerParams(
            dimension_semantics=("parallel", "parallel", "arbitrary"),
            vmem_limit_bytes=_maybe_vmem_limit(need, vmem_cap)),
    )(xb)

    if groups > 1:  # fold lane-packed groups (tiny (B,1,128) arrays, plain JAX)
        s = s.reshape(B, 1, groups, group_stride).sum(axis=2)
        ss = ss.reshape(B, 1, groups, group_stride).sum(axis=2)
    inv_n = 1.0 / n_total
    mean = s * inv_n
    var = jnp.maximum(ss * inv_n - mean * mean, 0.0)
    rstd = lax.rsqrt(var + EPS)
    if groups > 1:
        mean = jnp.tile(mean, (1, 1, groups))
        rstd = jnp.tile(rstd, (1, 1, groups))

    need = 4 * tile_elems * itemsize + 2 * tile_elems * 4 + (2 << 20)
    out = pl.pallas_call(
        _apply_kernel,
        out_shape=jax.ShapeDtypeStruct(xb.shape, xb.dtype),
        grid=(B, n_d, n_l),
        in_specs=[pl.BlockSpec((1, tl, td), lambda b, d, l: (b, l, d)),
                  pl.BlockSpec((1, 1, td), lambda b, d, l: (b, 0, d)),
                  pl.BlockSpec((1, 1, td), lambda b, d, l: (b, 0, d))],
        out_specs=pl.BlockSpec((1, tl, td), lambda b, d, l: (b, l, d)),
        compiler_params=pltpu.CompilerParams(
            dimension_semantics=("parallel", "parallel", "parallel"),
            vmem_limit_bytes=_maybe_vmem_limit(need, vmem_cap)),
    )(xb, mean, rstd)
    return out


# ----------------------------------------------------------------------------- wrapper
def mynorm1d(x, *, two_pass=None):
    """Forward pass of MyNorm1d (InstanceNorm1d, affine=False, eps=1e-5).

    x: (B, L, D) or (B, D). Returns an array of the same shape:
      - 3D: normalized over L per (batch, feature)
      - 2D: normalized over the batch axis per feature
        (matches permute(1,0) -> InstanceNorm1d -> permute back).
    """
    squeeze_2d = x.ndim == 2
    if squeeze_2d:
        x = x[None, :, :]  # (1, B, D): the old batch axis becomes the "length" axis
    assert x.ndim == 3, "expected 2D or 3D input"
    B, L, D = x.shape
    itemsize = x.dtype.itemsize
    budget, vmem_cap = _device_info()

    # Lane packing for small D: (B, L, D) -> (B, L/k, 128) so loads/stores are
    # lane-dense instead of masked vst.msk at D/128 lane utilization.
    groups, gstride = 1, D
    xb, Lb, Db = x, L, D
    if 0 < D < 128 and 128 % D == 0 and L % (128 // D) == 0:
        groups = 128 // D
        Lb = L // groups
        Db = 128
        xb = x.reshape(B, Lb, Db)
    # TODO(synk): when L % (128 // D) != 0 the small-D path still uses masked
    # (lane-sparse) stores; padding L in the wrapper would recover lane density.

    # Large-L fallback: two-pass sum / sum-of-squares over an "arbitrary" L grid axis so
    # VMEM stays bounded (v7x: 64 MiB) instead of growing the resident slab with L.
    td_min = 128 if Db % 128 == 0 else Db
    min_need = 4 * Lb * td_min * itemsize + 3 * Lb * td_min * 4
    use_two_pass = two_pass if two_pass is not None else min_need > (vmem_cap * 6) // 10

    if use_two_pass:
        out = _mynorm1d_two_pass(xb, L, groups, gstride, itemsize, budget, vmem_cap)
    else:
        TB, TD = _pick_tiles(B, Lb, Db, itemsize, budget)
        # Give megacore (v7x: 2 TensorCores) at least 2 parallel grid steps when possible.
        if (B // TB) * (Db // TD) < 2:
            if B >= 2:
                TB = _largest_divisor_at_most(B, max(1, B // 2))
            elif TD % 256 == 0:
                TD //= 2
        tile_elems = TB * Lb * TD
        # double-buffered in + out (input dtype) plus ~3 f32-equivalent in-body temps
        need = 4 * tile_elems * itemsize + 3 * tile_elems * 4
        kernel = functools.partial(_mynorm1d_kernel, inv_n=1.0 / L,
                                   groups=groups, group_stride=gstride)
        out = pl.pallas_call(
            kernel,
            out_shape=jax.ShapeDtypeStruct((B, Lb, Db), x.dtype),
            grid=(B // TB, Db // TD),
            in_specs=[pl.BlockSpec((TB, Lb, TD), lambda b, d: (b, 0, d))],
            out_specs=pl.BlockSpec((TB, Lb, TD), lambda b, d: (b, 0, d)),
            compiler_params=pltpu.CompilerParams(
                dimension_semantics=("parallel", "parallel"),
                vmem_limit_bytes=_maybe_vmem_limit(need, vmem_cap)),
        )(xb)

    if (Lb, Db) != (L, D):
        out = out.reshape(B, L, D)
    if squeeze_2d:
        out = out[0]
    return out


def mynorm1d_ref(x):
    """Pure-JAX reference mirroring the PyTorch forward."""
    axis = 0 if x.ndim == 2 else 1
    mean = jnp.mean(x, axis=axis, keepdims=True)
    var = jnp.mean((x - mean) ** 2, axis=axis, keepdims=True)
    return (x - mean) / jnp.sqrt(var + EPS)


if __name__ == "__main__":
    key = jax.random.PRNGKey(0)
    k1, k2, k3, k4, k5 = jax.random.split(key, 5)

    # Deterministic (unused-in-forward) parameters, matching the module's __init__.
    dim = 32
    weight = jnp.ones((dim,), jnp.float32)
    bias = jnp.zeros((dim,), jnp.float32)

    x3 = jax.random.normal(k1, (2, 8, 32), dtype=jnp.float32)      # small-D lane-packed path
    x2 = jax.random.normal(k2, (4, 32), dtype=jnp.float32)         # 2D path (normalize over batch)
    x3w = jax.random.normal(k3, (2, 16, 256), dtype=jnp.float32)   # lane-aligned feature-tiled path
    x3u = jax.random.normal(k4, (2, 8, 40), dtype=jnp.float32)     # unaligned-D fallback path
    x3b = jax.random.normal(k5, (2, 8, 256)).astype(jnp.bfloat16)  # bf16 (dtype-aware tiling)

    out3 = jax.block_until_ready(mynorm1d(x3))
    out2 = jax.block_until_ready(mynorm1d(x2))
    out3w = jax.block_until_ready(mynorm1d(x3w))
    out3u = jax.block_until_ready(mynorm1d(x3u))
    out3b = jax.block_until_ready(mynorm1d(x3b))
    out_tp = jax.block_until_ready(mynorm1d(x3w, two_pass=True))   # force large-L path

    for name, xi, oi in (("x3", x3, out3), ("x2", x2, out2),
                         ("x3w", x3w, out3w), ("x3u", x3u, out3u)):
        assert oi.shape == xi.shape and oi.dtype == xi.dtype, name
        assert jnp.allclose(oi, mynorm1d_ref(xi), atol=1e-4, rtol=1e-4), name
    assert out3b.shape == x3b.shape and out3b.dtype == x3b.dtype
    assert jnp.allclose(out3b.astype(jnp.float32),
                        mynorm1d_ref(x3b.astype(jnp.float32)), atol=3e-2, rtol=3e-2)
    assert out_tp.shape == x3w.shape and out_tp.dtype == x3w.dtype
    assert jnp.allclose(out_tp, mynorm1d_ref(x3w), atol=1e-4, rtol=1e-4)

    print("KERNEL_OK")
</pallas_src>

<mosaic_0001>
module attributes {stable_mosaic.version = 11 : i64} {
  func.func @_mynorm1d_kernel(%arg0: i32, %arg1: i32, %arg2: memref<1x2x128xf32, #tpu.memory_space<vmem>>, %arg3: memref<1x2x128xf32, #tpu.memory_space<vmem>>) attributes {dimension_semantics = [#tpu.dimension_semantics<parallel>, #tpu.dimension_semantics<parallel>], iteration_bounds = array<i64: 2, 1>, scalar_prefetch = 0 : i64, scratch_operands = 0 : i64, tpu.core_type = #tpu.core_type<tc>, window_params = [{transform_indices = @transform_0, window_bounds = array<i64: 1, 2, 128>}, {transform_indices = @transform_1, window_bounds = array<i64: 1, 2, 128>}]} {
    %c0 = arith.constant 0 : index
    %c0_0 = arith.constant 0 : index
    %c0_1 = arith.constant 0 : index
    %0 = vector.load %arg2[%c0, %c0_0, %c0_1] : memref<1x2x128xf32, #tpu.memory_space<vmem>>, vector<1x2x128xf32>
    %cst = arith.constant dense<0.000000e+00> : vector<1x128xf32>
    %1 = vector.multi_reduction <add>, %0, %cst [1] : vector<1x2x128xf32> to vector<1x128xf32>
    %2 = vector.shape_cast %1 : vector<1x128xf32> to vector<1x1x128xf32>
    %c32_i32 = arith.constant 32 : i32
    %3 = tpu.dynamic_rotate %2 by %c32_i32 dim 2 : vector<1x1x128xf32>, i32 -> vector<1x1x128xf32>
    %4 = arith.addf %2, %3 : vector<1x1x128xf32>
    %c64_i32 = arith.constant 64 : i32
    %5 = tpu.dynamic_rotate %4 by %c64_i32 dim 2 : vector<1x1x128xf32>, i32 -> vector<1x1x128xf32>
    %6 = arith.addf %4, %5 : vector<1x1x128xf32>
    %cst_2 = arith.constant 1.250000e-01 : f32
    %7 = vector.broadcast %cst_2 : f32 to vector<1x1x128xf32>
    %8 = arith.mulf %6, %7 : vector<1x1x128xf32>
    %9 = vector.broadcast %8 : vector<1x1x128xf32> to vector<1x2x128xf32>
    %10 = arith.subf %0, %9 : vector<1x2x128xf32>
    %11 = arith.mulf %10, %10 : vector<1x2x128xf32>
    %cst_3 = arith.constant dense<0.000000e+00> : vector<1x128xf32>
    %12 = vector.multi_reduction <add>, %11, %cst_3 [1] : vector<1x2x128xf32> to vector<1x128xf32>
    %13 = vector.shape_cast %12 : vector<1x128xf32> to vector<1x1x128xf32>
    %c32_i32_4 = arith.constant 32 : i32
    %14 = tpu.dynamic_rotate %13 by %c32_i32_4 dim 2 : vector<1x1x128xf32>, i32 -> vector<1x1x128xf32>
    %15 = arith.addf %13, %14 : vector<1x1x128xf32>
    %c64_i32_5 = arith.constant 64 : i32
    %16 = tpu.dynamic_rotate %15 by %c64_i32_5 dim 2 : vector<1x1x128xf32>, i32 -> vector<1x1x128xf32>
    %17 = arith.addf %15, %16 : vector<1x1x128xf32>
    %cst_6 = arith.constant 1.250000e-01 : f32
    %18 = vector.broadcast %cst_6 : f32 to vector<1x1x128xf32>
    %19 = arith.mulf %17, %18 : vector<1x1x128xf32>
    %cst_7 = arith.constant 9.99999974E-6 : f32
    %20 = vector.broadcast %cst_7 : f32 to vector<1x1x128xf32>
    %21 = arith.addf %19, %20 : vector<1x1x128xf32>
    %22 = math.rsqrt %21 : vector<1x1x128xf32>
    %23 = vector.broadcast %22 : vector<1x1x128xf32> to vector<1x2x128xf32>
    %24 = arith.mulf %10, %23 : vector<1x2x128xf32>
    %c0_8 = arith.constant 0 : index
    %c0_9 = arith.constant 0 : index
    %c0_10 = arith.constant 0 : index
    %25 = vector.load %arg3[%c0_8, %c0_9, %c0_10] : memref<1x2x128xf32, #tpu.memory_space<vmem>>, vector<1x2x128xf32>
    tpu.vector_store %arg3[%c0_8, %c0_9, %c0_10], %24 {strides = array<i32>} : memref<1x2x128xf32, #tpu.memory_space<vmem>>, vector<1x2x128xf32>,
    return
  }
  func.func @transform_0(%arg0: i32, %arg1: i32) -> (i32, i32, i32) {
    %c0_i32 = arith.constant 0 : i32
    %c0_i32_0 = arith.constant 0 : i32
    return %arg0, %c0_i32, %arg1 : i32, i32, i32
  }
  func.func @transform_1(%arg0: i32, %arg1: i32) -> (i32, i32, i32) {
    %c0_i32 = arith.constant 0 : i32
    %c0_i32_0 = arith.constant 0 : i32
    return %arg0, %c0_i32, %arg1 : i32, i32, i32
  }
}

</mosaic_0001>

<bundles_post_ra>
// kernel: tpu_custom_call.1
= control target key start
LH: loop header
LB: loop body
LE: loop exit
PB: predicated region body
PF: predicated region fallthrough
CT: control target
= control target key end

     0   :  { %6 = vsyncpa [#allocation3], 0  ;;  %s631_s0 = inlined_call_operand.hbm [shape: f32[2,2,128], index: 0, kind: input, shape index: {}]   ;;  %s632_s1 = inlined_call_operand.hbm [shape: f32[2,2,128], index: 1, kind: output, shape index: {}]  }
   0x1   :  { %8 = vsyncpa [#allocation3 + $0x1], 0 }
   0x2   :  { %9 = vsyncpa [#allocation4], 0 }
   0x3   :  { %11 = vsyncpa [#allocation4 + $0x1], 0  ;;  %s491_s6 = smov 0   ;;  %s493_s7 = smov 0  }
   0x4   :  { %s495_s8 = smov 0   ;;  %s497_s9 = smov 0  }
   0x5   :  { %s499_s10 = smov 0   ;;  %s501_s11 = smov 0  }
   0x6 LB: > { %s288_s12 = sadd.s32 4294967295, %s475_s11   ;;  %s289_s13 = sadd.s32 4294967294, %s475_s11   ;;  %s475_s11 = sphi %s501_s11, %s17_s11   ;;  %s471_s10 = sphi %s499_s10, %s644_s10   ;;  %s467_s9 = sphi %s497_s9, %s643_s9   ;;  %s463_s8 = sphi %s495_s8, %s642_s8   ;;  %s459_s7 = sphi %s493_s7, %s641_s7   ;;  %s455_s6 = sphi %s491_s6, %s640_s6  }
   0x7   : > { %s29_s14 = sadd.s32 1, %s471_s10  ;;  %s38_s15 = sadd.s32 1, %s463_s8 }
   0x8   : > { %p31_p0 = scmp.ge.s32.totalorder %s29_s14, 2  ;;  %p45_p1 = scmp.ne.s32.totalorder %s463_s8, %s459_s7 }
   0x9   : > { %p46_p2 = scmp.eq.s32.totalorder %s475_s11, 0  ;;  %p51_p3 = scmp.ne.s32.totalorder %s459_s7, %s455_s6 }
   0xa   : > { %s646_s14 = smov (%p31_p0, %s29_s14), 0  ;;  %p52_p5 = scmp.eq.s32.totalorder %s288_s12, 0 }
   0xb   : > { %p532_p4 = por %p46_p2, %p45_p1  ;;  %s33_s17 = ssub.s32 %s471_s10, %s646_s14 }
   0xc   : > { %p77_p6 = scmp.eq.s32.totalorder %s288_s12, 1  ;;  %p36_p7 = scmp.eq.s32.totalorder %s33_s17, 0 }
   0xd   : > { %p538_p8 = por %p52_p5, %p51_p3  ;;  %p83_p10 = scmp.eq.s32.totalorder %s289_s13, 1 }
   0xe   : > { %p542_p9 = por %p77_p6, %p45_p1  ;;  %p313_p13 = scmp.lt.s32.totalorder %s475_s11, 2 }
   0xf   : > { %s547_s20 = scalar_select %p36_p7, %s463_s8, %s38_s15  }
  0x10   : > { %p549_p11 = por %p83_p10, %p51_p3  ;;  %s103_s22 = sand.u32 1, %s463_s8  }
  0x11   : > { %s292_s23 = sshll.u32 %s103_s22, 1  ;;  %s293_s24 = sshll.u32 %s471_s10, 5 }
  0x12   : > { %s636_s21 = scalar_select %p549_p11, 1, 0 }
  0x13   : > { %s113_s27 = scalar_lea.hbm %s631_s0, %s293_s24  ;;  %s107_s28 = scalar_lea.vmem [#allocation2], %s292_s23 }
  0x14   : > { %s115_s29 = sshll.u32 %s107_s28, 4  ;;  %p562_p0 = pnand %p313_p13, %p532_p4  ;;  %s116_s29 = int_to_ptr.vmem [resolvable:$true] %s115_s29 }
  0x15   : > { %p294_p1 = scmp.ge.s32.totalorder %s475_s11, 1  ;;  %p120_p2 = scmp.lt.s32.totalorder %s475_s11, 3 }
  0x16   : > { %s104_s2 = scalar_lea.sflag [#allocation3], %s103_s22  ;;  %p369_p3 = pneg %p562_p0 }
  0x17   : > { %s380_s3 = scalar_lea.vmem %s116_s29, 32  ;;  %s477_s4 = smov [#allocation2]  }
  0x18   : > { %p381_p5 = scmp.ne.s32.totalorder %s116_s29, %s380_s3  ;;  %s385_s5 = sshll.u32 %s477_s4, 4  ;;  %s386_s5 = int_to_ptr.vmem [resolvable:$false] %s385_s5 }
  0x19   : > { %s387_s12 = scalar_lea.vmem %s386_s5, 64  ;;  %p388_p10 = scmp.lt.s32.totalorder %s116_s29, %s386_s5 }
  0x1a   : > { %p383_p6 = pnand %p381_p5, %p369_p3  ;;  %p389_p12 = scmp.lt.s32.totalorder %s387_s12, %s380_s3 }
  0x1c   : > { %p384_p7 = pneg %p383_p6  ;;  %p390_p4 = por %p389_p12, %p388_p10 }
  0x1e   : > { %p391_p13 = pnand %p390_p4, %p384_p7 }
  0x20   : > { %394 = shalt.err (!%p391_p13)
}
  0x21   : > { %308 = dma.hbm_to_vmem [thread:$0]  (!%p562_p0), %s113_s27, 32, %s116_s29, %s104_s2  }
  0x22   : > { %p121_p11 = pnand %p294_p1, %p120_p2 }
  0x23   : > { %s577_s13 = sand.u32 (!%p121_p11), 1, %s459_s7  }
  0x24   : > { %124 = sbr.rel (%p121_p11) target bundleno = 580 (0x244), region = 24  ;;  %s295_s15 = sshll.u32 (!%p121_p11), %s577_s13, 1 }
  0x25   : > { %s127_s16 = scalar_lea.sflag (!%p121_p11), [#allocation3], %s577_s13  ;;  %s130_s17 = scalar_lea.vmem (!%p121_p11), [#allocation2], %s295_s15 }
  0x29   : > { %446 = dma.done.wait (%p538_p8), %s127_s16, 32  }
  0x2a   : > { %448 = vsyncadd (%p538_p8), %s127_s16, 4294967264  ;;  %vm150_vm0 = vcmask 1041408   ;;  %v149_v0 = vld [vmem:[%s130_s17] sm:$0x3]  ;;  %s478_s22 = smov 32   ;;  %s479_s23 = smov 64   ;;  %v165_v10 = vlaneseq }
  0x2b   : > { %v151_v1 = vsel %vm150_vm0, %v149_v0, 0.0  ;;  %s298_s18 = sshll.u32 %s467_s9, 5  ;;  %s148_s24 = scalar_lea.vmem [#allocation5], %s295_s15 }
  0x2c   : > { %v152_v2 = vrot.slane %v151_v1, 4  ;;  %v166_v11 = vshrl.u32 %v165_v10, 7  ;;  %s208_s25 = sshll.u32 %s148_s24, 4  ;;  %s206_s28 = scalar_lea.hbm %s632_s1, %s298_s18  ;;  %s209_s25 = int_to_ptr.vmem [resolvable:$true] %s208_s25 }
  0x2d   : > { %s194_s29 = scalar_lea.sflag [#allocation4], %s577_s13  ;;  %s395_s30 = scalar_lea.vmem %s209_s25, 32 }
  0x2e   : > { %v153_v3 = vadd.f32 %v152_v2, %v151_v1  ;;  %v167_v13 = vsub.s32 0, %v166_v11  ;;  %p396_p8 = scmp.ne.s32.totalorder %s209_s25, %s395_s30  ;;  %s480_s2 = smov [#allocation5]  }
  0x2f   : > { %s399_s3 = sshll.u32 %s480_s2, 4  ;;  %s400_s3 = int_to_ptr.vmem [resolvable:$false] %s399_s3 }
  0x30   : > { %v154_v4 = vrot.slane %v153_v3, 2  ;;  %p397_p11 = pnand %p396_p8, %p542_p9  ;;  %s401_s9 = scalar_lea.vmem %s400_s3, 64 }
  0x31   : > { %p402_p0 = scmp.lt.s32.totalorder %s209_s25, %s400_s3  ;;  %p403_p1 = scmp.lt.s32.totalorder %s401_s9, %s395_s30 }
  0x32   : > { %v155_v5 = vadd.f32 %v154_v4, %v153_v3  ;;  %p398_p12 = pneg %p397_p11 }
  0x33   : > { %p404_p2 = por %p403_p1, %p402_p0 }
  0x34   : > { %v156_v6 = vrot.slane %v155_v5, 1 }
  0x35   : > { %p405_p3 = pnand %p404_p2, %p398_p12 }
  0x36   : > { %v157_v7 = vadd.f32 %v156_v6, %v155_v5 }
  0x38   : > { %158 = vrot.lane.b32.xlu0 %v157_v7, %s478_s22 }
  0xaa   : > { %v159_v8 = vpop.permute.xlu0 %158 }
  0xab   : > { %v160_v9 = vadd.f32 %v159_v8, %v157_v7 }
  0xad   : > { %161 = vrot.lane.b32.xlu0 %v160_v9, %s479_s23 }
 0x11f   : > { %v162_v12 = vpop.permute.xlu0 %161 }
 0x120   : > { %v163_v14 = vadd.f32 %v162_v12, %v160_v9 }
 0x122   : > { %v164_v15 = vmul.f32 0.125, %v163_v14 }
 0x124   : > { %v168_v16 = vrot.slane %v164_v15, %v167_v13 }
 0x126   : > { %v169_v17 = vsub.f32 %v149_v0, %v168_v16 }
 0x128   : > { %v170_v18 = vmul.f32 %v169_v17, %v169_v17 }
 0x12a   : > { %v171_v19 = vsel %vm150_vm0, %v170_v18, 0.0 }
 0x12b   : > { %v172_v20 = vrot.slane %v171_v19, 4 }
 0x12d   : > { %v173_v21 = vadd.f32 %v172_v20, %v171_v19 }
 0x12f   : > { %v174_v22 = vrot.slane %v173_v21, 2 }
 0x131   : > { %v175_v23 = vadd.f32 %v174_v22, %v173_v21 }
 0x133   : > { %v176_v24 = vrot.slane %v175_v23, 1 }
 0x135   : > { %v177_v25 = vadd.f32 %v176_v24, %v175_v23 }
 0x137   : > { %178 = vrot.lane.b32.xlu1 %v177_v25, %s478_s22 }
 0x1a9   : > { %v179_v26 = vpop.permute.xlu1 %178 }
 0x1aa   : > { %v180_v27 = vadd.f32 %v179_v26, %v177_v25 }
 0x1ac   : > { %181 = vrot.lane.b32.xlu1 %v180_v27, %s479_s23 }
 0x21e   : > { %v182_v28 = vpop.permute.xlu1 %181 }
 0x21f   : > { %v183_v29 = vadd.f32 %v182_v28, %v180_v27 }
 0x221   : > { %v184_v30 = vmul.f32 0.125, %v183_v29 }
 0x223   : > { %v185_v31 = vadd.f32 1e-05, %v184_v30 }
 0x225   : > { %365 = vrsqrt.f32 %v185_v31 }
 0x232   : > { %v366_v32 = vpop.eup %365 }
 0x233   : > { %v190_v33 = vrot.slane %v366_v32, %v167_v13 }
 0x235   : > { %v191_v34 = vmul.f32 %v190_v33, %v169_v17 }
 0x237   : > { %192 = vst [vmem:[%s148_s24] sm:$0x3] %v191_v34 }
 0x238   : > { %408 = shalt.err (!%p405_p3)
}
 0x239   : > { %s409_s4 = scalar_lea.hbm %s206_s28, 32  ;;  %s413_s13 = scalar_lea.hbm %s632_s1, 64 }
 0x23a   : > { %p410_p5 = scmp.ne.s32.totalorder %s206_s28, %s409_s4  ;;  %p414_p10 = scmp.lt.s32.totalorder %s206_s28, %s632_s1 }
 0x23b   : > { %p415_p4 = scmp.lt.s32.totalorder %s413_s13, %s409_s4 }
 0x23c   : > { %p411_p6 = pnand %p410_p5, %p542_p9 }
 0x23d   : > { %p416_p13 = por %p415_p4, %p414_p10 }
 0x23e   : > { %p412_p7 = pneg %p411_p6 }
 0x240   : > { %p417_p8 = pnand %p416_p13, %p412_p7 }
 0x242   : > { %420 = shalt.err (!%p417_p8)
}
 0x243   : > { %303 = dma.vmem_to_hbm [thread:$0]  (%p542_p9), %s209_s25, 32, %s206_s28, %s194_s29  }
 0x244 PF: > { %s220_s17 = sand.u32 1, %s455_s6   ;;  %p638_p11 = scmp.ne.s32.totalorder %s636_s21, 0 }
 0x245   : > { %p639_p12 = scmp.ge.s32.totalorder %s475_s11, 2  ;;  %s221_s22 = scalar_lea.sflag [#allocation4], %s220_s17 }
 0x247   : > { %p310_p0 = pnand %p639_p12, %p638_p11 }
 0x249   : > { %p311_p1 = pneg %p310_p0 }
 0x24b   : > { %450 = dma.done.wait (%p311_p1), %s221_s22, 32  }
 0x24c   : > { %452 = vsyncadd (%p311_p1), %s221_s22, 4294967264  ;;  %s17_s11 = sadd.s32 1, %s475_s11   ;;  %s640_s6 = smov %s459_s7 }
 0x24d   : > { %p14_p2 = scmp.ge.s32.totalorder %s17_s11, 4   ;;  %s641_s7 = smov %s463_s8 }
 0x24e   : > { %s642_s8 = smov %s547_s20  ;;  %s643_s9 = smov %s471_s10 }
 0x24f   : > { %s644_s10 = smov %s646_s14  ;;  %16 = sbr.rel (!%p14_p2) target bundleno = 6 (0x6), region = 69 }
 0x254   :  { %226 = vsyncpa [#allocation3], 1 }
 0x255   :  { %228 = vsyncpa [#allocation3 + $0x1], 1 }
 0x256   :  { %229 = vsyncpa [#allocation4], 1 }
 0x257   :  { %231 = vsyncpa [#allocation4 + $0x1], 1 }

</bundles_post_ra>
